<compile_context>
chip_gen: v7x
topology: tpu7x:2x2x1
jax: 0.10.0
libtpu: 0.0.40
codegen_flags: <defaults>
</compile_context>

<pallas_src>
import jax
import jax.numpy as jnp
from jax.experimental import pallas as pl
from jax.experimental.pallas import tpu as pltpu


def _ce_kernel(class_ref, label_ref, loss_ref):
    # class_ref: (2, 8, TL) logits   label_ref: (8, TL) int32
    # loss_ref : (8, TL) f32
    x0 = class_ref[0].astype(jnp.float32)            # (8, TL) logit of class 0
    x1 = class_ref[1].astype(jnp.float32)            # (8, TL) logit of class 1
    lbl = label_ref[...]                              # (8, TL) int32

    valid = lbl >= 0                                  # ignore_index behaviour

    # log-sum-exp over the 2 classes, pure VPU/EUP, no cross-lane reduction:
    #   lse = max + log(1 + exp(min - max))
    m = jnp.maximum(x0, x1)
    mn = jnp.minimum(x0, x1)
    lse = m + jnp.log(1.0 + jnp.exp(mn - m))

    # target logit select (C == 2): label 0 -> x0, label 1 -> x1.
    # Invalid labels pick x1 but are masked to 0 below.
    sel = jnp.where(lbl == 0, x0, x1)

    loss = lse - sel
    loss_ref[...] = jnp.where(valid, loss, 0.0)


_SUB = 8      # sublanes
_LANE = 128   # lanes


def _pick_tile_l(l_total):
    # Prefer big tiles (amortize ~0.35us/grid-step overhead); VMEM is a
    # non-factor here (<1 MiB even at tile_l = 2048).
    for cand in (2048, 1024, 512, 256, 128):
        if l_total % cand == 0:
            return cand
    return l_total


def class_loss(class_out, label, keep_ratio=0.709, *, tile_l=None):
    N, C = class_out.shape
    assert C == 2, "MTCNN class head has exactly 2 classes"

    label_flat = label.reshape(N).astype(jnp.int32)

    # Pad the sample axis to a multiple of 8*128 so it can be viewed as a
    # fully sublane+lane dense (8, L) slab.  Padded samples get label -1 so
    # they contribute zero loss and never enter the top-k.
    chunk = _SUB * _LANE
    n_pad = ((N + chunk - 1) // chunk) * chunk
    pad = n_pad - N
    L = n_pad // _SUB

    x_t = class_out.T                                 # (2, N), native dtype
    if pad:
        x_t = jnp.pad(x_t, ((0, 0), (0, pad)))
        label_p = jnp.pad(label_flat, (0, pad), constant_values=-1)
    else:
        label_p = label_flat

    x_3d = x_t.reshape(2, _SUB, L)                    # free view, same order
    label_2d = label_p.reshape(_SUB, L)               # free view, same order

    if tile_l is None:
        tile_l = _pick_tile_l(L)
    assert L % tile_l == 0 and tile_l % _LANE == 0

    loss = pl.pallas_call(
        _ce_kernel,
        out_shape=jax.ShapeDtypeStruct((_SUB, L), jnp.float32),
        grid_spec=pltpu.PrefetchScalarGridSpec(
            num_scalar_prefetch=0,
            grid=(L // tile_l,),
            in_specs=[
                pl.BlockSpec((2, _SUB, tile_l), lambda i: (0, 0, i)),
                pl.BlockSpec((_SUB, tile_l), lambda i: (0, i)),
            ],
            out_specs=pl.BlockSpec((_SUB, tile_l), lambda i: (0, i)),
        ),
        compiler_params=pltpu.CompilerParams(
            dimension_semantics=("parallel",)
        ),
    )(x_3d, label_2d)

    loss = loss.reshape(n_pad)

    # num_valid from the (unpadded) label array — no extra kernel output.
    num_valid = jnp.sum((label_flat >= 0).astype(jnp.int32))
    # PyTorch promotes int_tensor * python_float to float32, then int()
    # truncates, so f32 multiply + floor matches the reference semantics.
    keep_num = jnp.floor(
        num_valid.astype(jnp.float32) * jnp.float32(keep_ratio)
    ).astype(jnp.int32)
    # Guard 0/0 -> NaN when there are no (or too few) valid labels.
    keep_num = jnp.maximum(keep_num, 1)

    # TODO(synk): torch.topk with a data-dependent k has no clean Pallas
    # equivalent; emulate with a full descending sort + dynamic mask in JAX.
    sorted_loss = -jnp.sort(-loss)
    mask = (jnp.arange(n_pad) < keep_num).astype(jnp.float32)
    return jnp.sum(sorted_loss * mask) / keep_num.astype(jnp.float32)


def _reference(class_out, label, keep_ratio=0.709):
    """Pure-JAX reference mirroring the PyTorch module."""
    N, _ = class_out.shape
    label = label.reshape(N)
    valid = label >= 0
    num_valid = jnp.sum(valid.astype(jnp.int32))
    keep_num = jnp.floor(
        num_valid.astype(jnp.float32) * jnp.float32(keep_ratio)
    ).astype(jnp.int32)
    logp = jax.nn.log_softmax(class_out.astype(jnp.float32), axis=-1)
    safe_lbl = jnp.where(valid, label, 0)
    loss = -jnp.take_along_axis(logp, safe_lbl[:, None], axis=-1)[:, 0]
    loss = jnp.where(valid, loss, 0.0)
    sorted_loss = -jnp.sort(-loss)
    mask = (jnp.arange(N) < keep_num).astype(jnp.float32)
    return jnp.sum(sorted_loss * mask) / keep_num.astype(jnp.float32)


if __name__ == "__main__":
    key = jax.random.PRNGKey(0)
    k1, k2 = jax.random.split(key)

    N, C = 64, 2  # MTCNN face/non-face classification head
    class_out = jax.random.normal(k1, (N, C), dtype=jnp.float32)
    # labels in {-1, 0, 1}; -1 entries are ignored by the class loss
    label = jax.random.randint(k2, (N,), -1, 2, dtype=jnp.int32)

    out = jax.block_until_ready(class_loss(class_out, label))
    ref = jax.block_until_ready(_reference(class_out, label))
    assert jnp.allclose(out, ref, rtol=1e-5, atol=1e-5), (out, ref)

    print("KERNEL_OK")
</pallas_src>

<mosaic_0001>
module attributes {stable_mosaic.version = 11 : i64} {
  func.func @_ce_kernel(%arg0: i32, %arg1: memref<2x8x128xf32, #tpu.memory_space<vmem>>, %arg2: memref<8x128xi32, #tpu.memory_space<vmem>>, %arg3: memref<8x128xf32, #tpu.memory_space<vmem>>) attributes {dimension_semantics = [#tpu.dimension_semantics<parallel>], iteration_bounds = array<i64: 1>, scalar_prefetch = 0 : i64, scratch_operands = 0 : i64, tpu.core_type = #tpu.core_type<tc>, window_params = [{transform_indices = @transform_0, window_bounds = array<i64: 2, 8, 128>}, {transform_indices = @transform_1, window_bounds = array<i64: 8, 128>}, {transform_indices = @transform_2, window_bounds = array<i64: 8, 128>}]} {
    %c0 = arith.constant 0 : index
    %c0_0 = arith.constant 0 : index
    %c0_1 = arith.constant 0 : index
    %0 = vector.load %arg1[%c0, %c0_0, %c0_1] : memref<2x8x128xf32, #tpu.memory_space<vmem>>, vector<1x8x128xf32>
    %1 = vector.shape_cast %0 : vector<1x8x128xf32> to vector<8x128xf32>
    %c1 = arith.constant 1 : index
    %c0_2 = arith.constant 0 : index
    %c0_3 = arith.constant 0 : index
    %2 = vector.load %arg1[%c1, %c0_2, %c0_3] : memref<2x8x128xf32, #tpu.memory_space<vmem>>, vector<1x8x128xf32>
    %3 = vector.shape_cast %2 : vector<1x8x128xf32> to vector<8x128xf32>
    %c0_4 = arith.constant 0 : index
    %c0_5 = arith.constant 0 : index
    %4 = vector.load %arg2[%c0_4, %c0_5] : memref<8x128xi32, #tpu.memory_space<vmem>>, vector<8x128xi32>
    %c0_i32 = arith.constant 0 : i32
    %5 = vector.broadcast %c0_i32 : i32 to vector<8x128xi32>
    %6 = arith.cmpi sge, %4, %5 : vector<8x128xi32>
    %7 = arith.maximumf %1, %3 : vector<8x128xf32>
    %8 = arith.minimumf %1, %3 : vector<8x128xf32>
    %9 = arith.subf %8, %7 : vector<8x128xf32>
    %10 = math.exp %9 : vector<8x128xf32>
    %cst = arith.constant 1.000000e+00 : f32
    %11 = vector.broadcast %cst : f32 to vector<8x128xf32>
    %12 = arith.addf %11, %10 : vector<8x128xf32>
    %13 = math.log %12 : vector<8x128xf32>
    %14 = arith.addf %7, %13 : vector<8x128xf32>
    %c0_i32_6 = arith.constant 0 : i32
    %15 = vector.broadcast %c0_i32_6 : i32 to vector<8x128xi32>
    %16 = arith.cmpi eq, %4, %15 : vector<8x128xi32>
    %17 = arith.select %16, %1, %3 : vector<8x128xi1>, vector<8x128xf32>
    %18 = arith.subf %14, %17 : vector<8x128xf32>
    %cst_7 = arith.constant 0.000000e+00 : f32
    %19 = vector.broadcast %cst_7 : f32 to vector<8x128xf32>
    %20 = arith.select %6, %18, %19 : vector<8x128xi1>, vector<8x128xf32>
    %c0_8 = arith.constant 0 : index
    %c0_9 = arith.constant 0 : index
    %21 = vector.load %arg3[%c0_8, %c0_9] : memref<8x128xf32, #tpu.memory_space<vmem>>, vector<8x128xf32>
    tpu.vector_store %arg3[%c0_8, %c0_9], %20 {strides = array<i32>} : memref<8x128xf32, #tpu.memory_space<vmem>>, vector<8x128xf32>,
    return
  }
  func.func @transform_0(%arg0: i32) -> (i32, i32, i32) {
    %c0_i32 = arith.constant 0 : i32
    %c0_i32_0 = arith.constant 0 : i32
    %c0_i32_1 = arith.constant 0 : i32
    return %c0_i32, %c0_i32_0, %arg0 : i32, i32, i32
  }
  func.func @transform_1(%arg0: i32) -> (i32, i32) {
    %c0_i32 = arith.constant 0 : i32
    %c0_i32_0 = arith.constant 0 : i32
    return %c0_i32, %arg0 : i32, i32
  }
  func.func @transform_2(%arg0: i32) -> (i32, i32) {
    %c0_i32 = arith.constant 0 : i32
    %c0_i32_0 = arith.constant 0 : i32
    return %c0_i32, %arg0 : i32, i32
  }
}

</mosaic_0001>

<bundles_post_ra>
// kernel: tpu_custom_call.1
= control target key start
LH: loop header
LB: loop body
LE: loop exit
PB: predicated region body
PF: predicated region fallthrough
CT: control target
= control target key end

     0   :  { %7 = vsyncpa [#allocation3], 0  ;;  %s210_s0 = inlined_call_operand.hbm [shape: f32[2,8,128], index: 0, kind: input, shape index: {}]   ;;  %s211_s1 = inlined_call_operand.hbm [shape: s32[8,128], index: 1, kind: input, shape index: {}]   ;;  %s212_s2 = inlined_call_operand.hbm [shape: f32[8,128], index: 2, kind: output, shape index: {}]  }
   0x1   :  { %8 = vsyncpa [#allocation6], 0 }
   0x2   :  { %9 = vsyncpa [#allocation4], 0  ;;  %s154_s9 = smov [#allocation2]   ;;  %s82_s13 = scalar_lea.hbm %s210_s0, 256 }
   0x3   :  { %s15_s10 = sshll.u32 %s154_s9, 4  ;;  %p83_p0 = scmp.ne.s32.totalorder %s210_s0, %s82_s13  ;;  %s16_s10 = int_to_ptr.vmem [resolvable:$true] %s15_s10 }
   0x4   :  { %p86_p1 = scmp.lt.u32.totalorder %s82_s13, %s210_s0 }
   0x6   :  { %p88_p2 = pnand %p86_p1, %p83_p0 }
   0x8   :  { %91 = shalt.err (!%p88_p2)
}
   0x9   :  { %s92_s18 = scalar_lea.vmem %s16_s10, 256  ;;  %p97_p4 = scmp.lt.s32.totalorder %s16_s10, %s16_s10 }
   0xa   :  { %p93_p3 = scmp.ne.s32.totalorder %s16_s10, %s92_s18  ;;  %p98_p5 = scmp.lt.s32.totalorder %s92_s18, %s92_s18 }
   0xc   :  { %p99_p6 = por %p98_p5, %p97_p4 }
   0xe   :  { %p100_p7 = pnand %p99_p6, %p93_p3 }
  0x10   :  { %103 = shalt.err (!%p100_p7)
}
  0x11   :  { %s155_s19 = smov 128   ;;  %s156_s20 = smov 8  }
  0x12   :  { %21 = dma.hbm_to_vmem [thread:$0]  %s210_s0, 256, %s16_s10, [#allocation3], %s155_s19, %s155_s19, %s156_s20  }
  0x13   :  { %s157_s23 = smov [#allocation5]   ;;  %s104_s27 = scalar_lea.hbm %s211_s1, 128 }
  0x14   :  { %s28_s24 = sshll.u32 %s157_s23, 4  ;;  %p105_p8 = scmp.ne.s32.totalorder %s211_s1, %s104_s27  ;;  %s29_s24 = int_to_ptr.vmem [resolvable:$true] %s28_s24 }
  0x15   :  { %p108_p9 = scmp.lt.u32.totalorder %s104_s27, %s211_s1 }
  0x17   :  { %p110_p10 = pnand %p108_p9, %p105_p8 }
  0x19   :  { %113 = shalt.err (!%p110_p10)
}
  0x1a   :  { %s114_s4 = scalar_lea.vmem %s29_s24, 128  ;;  %p119_p12 = scmp.lt.s32.totalorder %s29_s24, %s29_s24 }
  0x1b   :  { %p115_p11 = scmp.ne.s32.totalorder %s29_s24, %s114_s4  ;;  %p120_p13 = scmp.lt.s32.totalorder %s114_s4, %s114_s4 }
  0x1d   :  { %p121_p0 = por %p120_p13, %p119_p12 }
  0x1f   :  { %p122_p1 = pnand %p121_p0, %p115_p11 }
  0x21   :  { %125 = shalt.err (!%p122_p1)
}
  0x22   :  { %31 = dma.hbm_to_vmem [thread:$0]  %s211_s1, 128, %s29_s24, [#allocation6]  }
  0x23   :  { %148 = dma.done.wait [#allocation3], 256  }
  0x24   :  { %149 = vsyncadd [#allocation3], 4294967040 }
  0x25   :  { %150 = dma.done.wait [#allocation6], 128  }
  0x26   :  { %151 = vsyncadd [#allocation6], 4294967168  ;;  %v38_v0 = vld [vmem:[#allocation2] sm:$0xff]  ;;  %v40_v1 = vld [vmem:[#allocation2 + $0x8] sm:$0xff]  ;;  %s158_s1 = smov [#allocation7]  }
  0x27   :  { %v43_v2 = vmax.f32 %v38_v0, %v40_v1  ;;  %v44_v3 = vmin.f32 %v38_v0, %v40_v1  ;;  %v41_v8 = vld [vmem:[#allocation5] sm:$0xff]  ;;  %s63_s6 = sshll.u32 %s158_s1, 4  ;;  %s64_s6 = int_to_ptr.vmem [resolvable:$true] %s63_s6 }
  0x28   :  { %vm52_vm0 = vcmp.eq.s32.totalorder %v41_v8, 0  ;;  %vm42_vm1 = vcmp.ge.s32.totalorder %v41_v8, 0  ;;  %s126_s7 = scalar_lea.vmem %s64_s6, 128  ;;  %p131_p3 = scmp.lt.s32.totalorder %s64_s6, %s64_s6 }
  0x29   :  { %v45_v4 = vsub.f32 %v44_v3, %v43_v2  ;;  %v53_v11 = vsel %vm52_vm0, %v38_v0, %v40_v1  ;;  %p127_p2 = scmp.ne.s32.totalorder %s64_s6, %s126_s7  ;;  %p132_p4 = scmp.lt.s32.totalorder %s126_s7, %s126_s7 }
  0x2b   :  { %v46_v5 = vmul.f32 1.442695, %v45_v4  ;;  %p133_p5 = por %p132_p4, %p131_p3 }
  0x2d   :  { %78 = vpow2.f32 %v46_v5  ;;  %p134_p6 = pnand %p133_p5, %p127_p2 }
  0x37   :  { %v79_v6 = vpop.eup %78 }
  0x38   :  { %v48_v7 = vadd.f32 1.0, %v79_v6 }
  0x3a   :  { %80 = vlog2.f32 %v48_v7 }
  0x44   :  { %v81_v9 = vpop.eup %80 }
  0x45   :  { %v50_v10 = vmul.f32 0.6931472, %v81_v9 }
  0x47   :  { %v51_v12 = vadd.f32 %v50_v10, %v43_v2 }
  0x49   :  { %v54_v13 = vsub.f32 %v51_v12, %v53_v11 }
  0x4b   :  { %v55_v14 = vsel %vm42_vm1, %v54_v13, 0.0 }
  0x4c   :  { %56 = vst [vmem:[#allocation7] sm:$0xff] %v55_v14 }
  0x4d   :  { %137 = shalt.err (!%p134_p6)
}
  0x4e   :  { %s138_s10 = scalar_lea.hbm %s212_s2, 128 }
  0x4f   :  { %p139_p7 = scmp.ne.s32.totalorder %s212_s2, %s138_s10  ;;  %p142_p8 = scmp.lt.u32.totalorder %s138_s10, %s212_s2 }
  0x51   :  { %p144_p9 = pnand %p142_p8, %p139_p7 }
  0x53   :  { %147 = shalt.err (!%p144_p9)
}
  0x54   :  { %66 = dma.vmem_to_hbm [thread:$0]  %s64_s6, 128, %s212_s2, [#allocation4]  }
  0x55   :  { %152 = dma.done.wait [#allocation4], 128  }
  0x56   :  { %153 = vsyncadd [#allocation4], 4294967168 }
  0x57   :  { %70 = vsyncpa [#allocation3], 1 }
  0x58   :  { %71 = vsyncpa [#allocation6], 1 }
  0x59   :  { %72 = vsyncpa [#allocation4], 1 }

</bundles_post_ra>
